<compile_context>
chip_gen: v5e
topology: v5e:2x2
jax: 0.10.0
libtpu: 0.0.40
codegen_flags: <defaults>
</compile_context>

<pallas_src>
import jax
import jax.numpy as jnp
import numpy as np
from jax import lax
from jax.experimental import pallas as pl
from jax.experimental.pallas import tpu as pltpu


def _make_convlstm_kernel(Ch):
    """Kernel body.  Everything is (channels, pixels) = lane-dense."""

    def kernel(p_ref, w_ref, c_ref, hc_out_ref):
        # p_ref      : (Kp, M)     fused im2col patches [x | h | ones | 0-pad]
        # w_ref      : (4*Ch, Kp)  fused conv weight    [wx | wh | bias | 0-pad]
        # c_ref      : (Ch, M)     current cell state
        # hc_out_ref : (2*Ch, M)   rows [0:Ch] = h_next, rows [Ch:2Ch] = c_next
        #
        # One MXU matmul gives conv pre-activation + bias, (4*Ch, M) f32
        # = 16 dense vregs.  Bias is folded in via the ones-row / bias-column.
        acc = jnp.dot(w_ref[...], p_ref[...],
                      preferred_element_type=jnp.float32)

        # torch.split order along output channels: i, f, o, g.
        cc_i = acc[0 * Ch:1 * Ch, :]
        cc_f = acc[1 * Ch:2 * Ch, :]
        cc_o = acc[2 * Ch:3 * Ch, :]
        cc_g = acc[3 * Ch:4 * Ch, :]

        # Gate phase: 5 transcendental maps on (Ch, 512) tiles (EUP); the
        # VALU mul/adds hide under it.  Nothing here is worth micro-tuning.
        i_g = jax.nn.sigmoid(cc_i)
        f_g = jax.nn.sigmoid(cc_f)
        o_g = jax.nn.sigmoid(cc_o)
        g_g = jnp.tanh(cc_g)

        c_cur = c_ref[...].astype(jnp.float32)
        c_nxt = f_g * c_cur + i_g * g_g
        h_nxt = o_g * jnp.tanh(c_nxt)

        # Two sublane-aligned, lane-dense slice stores into the single output.
        hc_out_ref[0 * Ch:1 * Ch, :] = h_nxt.astype(hc_out_ref.dtype)
        hc_out_ref[1 * Ch:2 * Ch, :] = c_nxt.astype(hc_out_ref.dtype)

    return kernel


def _im2col_t(a_nchw, KH, KW, ph, pw):
    """Transposed im2col: (B, C, H, W) -> (KH*KW*C, B*H*W), zero-padded SAME."""
    # TODO(synk): for large H/W this wrapper-side im2col is ~9x HBM
    # amplification; the recurrent h-contribution should then be formed
    # in-kernel via shifted accumulating dots instead.
    B, C, H, W = a_nchw.shape
    ap = jnp.pad(a_nchw, ((0, 0), (0, 0), (ph, ph), (pw, pw)))
    taps = []
    for kh in range(KH):
        for kw in range(KW):
            win = ap[:, :, kh:kh + H, kw:kw + W]          # (B, C, H, W)
            taps.append(jnp.transpose(win, (1, 0, 2, 3)).reshape(C, B * H * W))
    # Row index = kh*KW*C + kw*C + ci  (matches the weight layout below).
    return jnp.concatenate(taps, axis=0)


def conv_lstm_cell(x_nchw, h_nchw, c_nchw, weight_oihw, bias, kernel_size):
    """Pallas ConvLSTMCell.forward.  Inputs/outputs use PyTorch NCHW layout."""
    B, Cin, H, W = x_nchw.shape
    Ch = h_nchw.shape[1]
    KH, KW = kernel_size
    if KH % 2 != 1 or KW % 2 != 1:
        raise ValueError("ConvLSTMCell 'same' padding assumes odd kernel size")
    ph_, pw_ = KH // 2, KW // 2
    M = B * H * W

    Kx = KH * KW * Cin
    Kh = KH * KW * Ch
    K = Kx + Kh
    # Pad contraction dim (incl. the bias ones-row) to a multiple of 8,
    # and to at least 128 so the MXU sees full, aligned K groups.
    Kp = ((K + 1 + 7) // 8) * 8
    if Kp < 128:
        Kp = 128

    dt = x_nchw.dtype

    # Fused, transposed patch matrix: [x-patches | h-patches | ones | zeros].
    px_t = _im2col_t(x_nchw, KH, KW, ph_, pw_)            # (Kx, M)
    ph_t = _im2col_t(h_nchw, KH, KW, ph_, pw_)            # (Kh, M)
    p_fused = jnp.concatenate(
        [px_t, ph_t,
         jnp.ones((1, M), dt),
         jnp.zeros((Kp - K - 1, M), dt)], axis=0)          # (Kp, M)

    # Fused weight: [wx | wh | bias-column | zeros], column index matches the
    # patch row index (kh*KW*Cpart + kw*Cpart + ci within each part).
    wx_lhs = jnp.transpose(weight_oihw[:, :Cin], (0, 2, 3, 1)).reshape(
        4 * Ch, Kx)
    wh_lhs = jnp.transpose(weight_oihw[:, Cin:], (0, 2, 3, 1)).reshape(
        4 * Ch, Kh)
    w_fused = jnp.concatenate(
        [wx_lhs, wh_lhs,
         bias.reshape(4 * Ch, 1).astype(dt),
         jnp.zeros((4 * Ch, Kp - K - 1), dt)], axis=1)     # (4*Ch, Kp)

    # Cell state in (Ch, M) channel-on-sublane / pixel-on-lane layout.
    c2d = jnp.transpose(c_nchw, (1, 0, 2, 3)).reshape(Ch, M)

    kernel = _make_convlstm_kernel(Ch)
    out_shape = jax.ShapeDtypeStruct((2 * Ch, M), dt)

    bytes_f32 = 4
    cost = pl.CostEstimate(
        flops=2 * (4 * Ch) * Kp * M + 10 * Ch * M,
        transcendentals=5 * Ch * M,
        bytes_accessed=(p_fused.size + w_fused.size + c2d.size
                        + 2 * Ch * M) * bytes_f32)

    # Tiny problem: single gridless invocation, everything resident in VMEM
    # (< 0.3 MiB total).
    hc2d = pl.pallas_call(
        kernel,
        out_shape=out_shape,
        in_specs=[pl.BlockSpec(memory_space=pltpu.MemorySpace.VMEM)] * 3,
        out_specs=pl.BlockSpec(memory_space=pltpu.MemorySpace.VMEM),
        cost_estimate=cost,
    )(p_fused, w_fused, c2d)

    # (2*Ch, M) -> split -> NCHW.
    h_next = jnp.transpose(hc2d[:Ch].reshape(Ch, B, H, W), (1, 0, 2, 3))
    c_next = jnp.transpose(hc2d[Ch:].reshape(Ch, B, H, W), (1, 0, 2, 3))
    return h_next, c_next


def conv_lstm_cell_ref(x, h, c, weight, bias, kernel_size):
    """Pure-JAX reference matching the PyTorch semantics (NCHW)."""
    KH, KW = kernel_size
    ph_, pw_ = KH // 2, KW // 2
    combined = jnp.concatenate([x, h], axis=1)
    conv = lax.conv_general_dilated(
        combined, weight, window_strides=(1, 1),
        padding=[(ph_, ph_), (pw_, pw_)],
        dimension_numbers=("NCHW", "OIHW", "NCHW"))
    conv = conv + bias[None, :, None, None]
    cc_i, cc_f, cc_o, cc_g = jnp.split(conv, 4, axis=1)
    i = jax.nn.sigmoid(cc_i)
    f = jax.nn.sigmoid(cc_f)
    o = jax.nn.sigmoid(cc_o)
    g = jnp.tanh(cc_g)
    c_next = f * c + i * g
    h_next = o * jnp.tanh(c_next)
    return h_next, c_next


if __name__ == "__main__":
    # Small shapes consistent with the module's forward.
    B, Cin, Ch, H, W = 2, 4, 8, 16, 16
    KH, KW = 3, 3
    dtype = jnp.float32

    key = jax.random.PRNGKey(0)
    kx, kh_, kc, kw_, kb = jax.random.split(key, 5)

    x = jax.random.normal(kx, (B, Cin, H, W), dtype)
    h0 = jax.random.normal(kh_, (B, Ch, H, W), dtype)
    c0 = jax.random.normal(kc, (B, Ch, H, W), dtype)

    # Deterministic parameter init, same shapes / fan-in scaling as nn.Conv2d.
    fan_in = (Cin + Ch) * KH * KW
    bound = 1.0 / np.sqrt(fan_in)
    weight = jax.random.uniform(kw_, (4 * Ch, Cin + Ch, KH, KW), dtype,
                                minval=-bound, maxval=bound)
    bias = jax.random.uniform(kb, (4 * Ch,), dtype, minval=-bound, maxval=bound)

    fwd = jax.jit(lambda *a: conv_lstm_cell(*a, kernel_size=(KH, KW)))
    h_next, c_next = fwd(x, h0, c0, weight, bias)
    jax.block_until_ready((h_next, c_next))

    h_ref, c_ref = conv_lstm_cell_ref(x, h0, c0, weight, bias, (KH, KW))
    np.testing.assert_allclose(np.asarray(h_next), np.asarray(h_ref),
                               rtol=1e-5, atol=1e-5)
    np.testing.assert_allclose(np.asarray(c_next), np.asarray(c_ref),
                               rtol=1e-5, atol=1e-5)

    print("KERNEL_OK")
</pallas_src>

<mosaic_0001>
module attributes {stable_mosaic.version = 11 : i64} {
  func.func @kernel(%arg0: memref<128x512xf32, #tpu.memory_space<vmem>>, %arg1: memref<32x128xf32, #tpu.memory_space<vmem>>, %arg2: memref<8x512xf32, #tpu.memory_space<vmem>>, %arg3: memref<16x512xf32, #tpu.memory_space<vmem>>) attributes {dimension_semantics = [], scalar_prefetch = 0 : i64, scratch_operands = 0 : i64, tpu.core_type = #tpu.core_type<tc>} {
    %c0 = arith.constant 0 : index
    %c0_0 = arith.constant 0 : index
    %0 = vector.load %arg1[%c0, %c0_0] : memref<32x128xf32, #tpu.memory_space<vmem>>, vector<32x128xf32>
    %c0_1 = arith.constant 0 : index
    %c0_2 = arith.constant 0 : index
    %1 = vector.load %arg0[%c0_1, %c0_2] : memref<128x512xf32, #tpu.memory_space<vmem>>, vector<128x512xf32>
    %cst = arith.constant dense<0.000000e+00> : vector<32x512xf32>
    %2 = tpu.matmul %0, %1, %cst {dimension_numbers = #tpu.dot_dimension_numbers<[1], [0], [0], [1], [0, 0, 1, 1], [], []>} : vector<32x128xf32>, vector<128x512xf32>, vector<32x512xf32> -> vector<32x512xf32>
    %3 = vector.extract_strided_slice %2 {offsets = [0, 0], sizes = [8, 512], strides = [1, 1]} : vector<32x512xf32> to vector<8x512xf32>
    %4 = vector.extract_strided_slice %2 {offsets = [8, 0], sizes = [8, 512], strides = [1, 1]} : vector<32x512xf32> to vector<8x512xf32>
    %5 = vector.extract_strided_slice %2 {offsets = [16, 0], sizes = [8, 512], strides = [1, 1]} : vector<32x512xf32> to vector<8x512xf32>
    %6 = vector.extract_strided_slice %2 {offsets = [24, 0], sizes = [8, 512], strides = [1, 1]} : vector<32x512xf32> to vector<8x512xf32>
    %7 = arith.negf %3 : vector<8x512xf32>
    %8 = math.exp %7 : vector<8x512xf32>
    %cst_3 = arith.constant 1.000000e+00 : f32
    %9 = vector.broadcast %cst_3 : f32 to vector<8x512xf32>
    %10 = arith.addf %9, %8 : vector<8x512xf32>
    %11 = arith.divf %9, %10 : vector<8x512xf32>
    %12 = arith.negf %4 : vector<8x512xf32>
    %13 = math.exp %12 : vector<8x512xf32>
    %cst_4 = arith.constant 1.000000e+00 : f32
    %14 = vector.broadcast %cst_4 : f32 to vector<8x512xf32>
    %15 = arith.addf %14, %13 : vector<8x512xf32>
    %16 = arith.divf %14, %15 : vector<8x512xf32>
    %17 = arith.negf %5 : vector<8x512xf32>
    %18 = math.exp %17 : vector<8x512xf32>
    %cst_5 = arith.constant 1.000000e+00 : f32
    %19 = vector.broadcast %cst_5 : f32 to vector<8x512xf32>
    %20 = arith.addf %19, %18 : vector<8x512xf32>
    %21 = arith.divf %19, %20 : vector<8x512xf32>
    %22 = math.tanh %6 : vector<8x512xf32>
    %c0_6 = arith.constant 0 : index
    %c0_7 = arith.constant 0 : index
    %23 = vector.load %arg2[%c0_6, %c0_7] : memref<8x512xf32, #tpu.memory_space<vmem>>, vector<8x512xf32>
    %24 = arith.mulf %16, %23 : vector<8x512xf32>
    %25 = arith.mulf %11, %22 : vector<8x512xf32>
    %26 = arith.addf %24, %25 : vector<8x512xf32>
    %27 = math.tanh %26 : vector<8x512xf32>
    %28 = arith.mulf %21, %27 : vector<8x512xf32>
    %c0_8 = arith.constant 0 : index
    %c0_9 = arith.constant 0 : index
    %29 = vector.load %arg3[%c0_8, %c0_9] : memref<16x512xf32, #tpu.memory_space<vmem>>, vector<8x512xf32>
    tpu.vector_store %arg3[%c0_8, %c0_9], %28 {strides = array<i32>} : memref<16x512xf32, #tpu.memory_space<vmem>>, vector<8x512xf32>,
    %c8 = arith.constant 8 : index
    %c0_10 = arith.constant 0 : index
    %30 = vector.load %arg3[%c8, %c0_10] : memref<16x512xf32, #tpu.memory_space<vmem>>, vector<8x512xf32>
    tpu.vector_store %arg3[%c8, %c0_10], %26 {strides = array<i32>} : memref<16x512xf32, #tpu.memory_space<vmem>>, vector<8x512xf32>,
    return
  }
}

</mosaic_0001>

<bundles_post_ra>
// kernel: _lambda_.1
= control target key start
LH: loop header
LB: loop body
LE: loop exit
PB: predicated region body
PF: predicated region fallthrough
CT: control target
= control target key end

     0   :  { %s1126_s0 = inlined_call_operand.vmem [shape: f32[128,512], index: 0, kind: input, shape index: {}]   ;;  %s1127_s1 = inlined_call_operand.vmem [shape: f32[32,128], index: 1, kind: input, shape index: {}]   ;;  %s1128_s2 = inlined_call_operand.vmem [shape: f32[8,512], index: 2, kind: input, shape index: {}]   ;;  %s1129_s3 = inlined_call_operand.vmem [shape: f32[16,512], index: 3, kind: output, shape index: {}]  }
   0x1   :  { %v78_v0 = vld [vmem:[%s1126_s0 + $0x1e0] sm:$0xff]  ;;  %v79_v1 = vld [vmem:[%s1126_s0 + $0x1e8] sm:$0xff]  ;;  %v80_v2 = vld [vmem:[%s1126_s0 + $0x1f0] sm:$0xff] }
   0x2   :  { %82 = vmatpush.msra.mxu0 %v78_v0  ;;  %111 = vmatpush.msra.mxu1 %v79_v1  ;;  %v81_v3 = vld [vmem:[%s1126_s0 + $0x1f8] sm:$0xff]  ;;  %v74_v4 = vld [vmem:[%s1126_s0 + $0x1c0] sm:$0xff]  ;;  %v75_v5 = vld [vmem:[%s1126_s0 + $0x1c8] sm:$0xff] }
   0x3   :  { %140 = vmatpush.msra.mxu2 %v80_v2  ;;  %169 = vmatpush.msra.mxu3 %v81_v3  ;;  %v76_v6 = vld [vmem:[%s1126_s0 + $0x1d0] sm:$0xff]  ;;  %v77_v7 = vld [vmem:[%s1126_s0 + $0x1d8] sm:$0xff]  ;;  %v70_v8 = vld [vmem:[%s1126_s0 + $0x1a0] sm:$0xff] }
   0x4   :  { %83 = vmatpush.msra.mxu0 %v74_v4  ;;  %112 = vmatpush.msra.mxu1 %v75_v5  ;;  %v71_v9 = vld [vmem:[%s1126_s0 + $0x1a8] sm:$0xff]  ;;  %v72_v10 = vld [vmem:[%s1126_s0 + $0x1b0] sm:$0xff]  ;;  %v73_v11 = vld [vmem:[%s1126_s0 + $0x1b8] sm:$0xff] }
   0x5   :  { %141 = vmatpush.msra.mxu2 %v76_v6  ;;  %170 = vmatpush.msra.mxu3 %v77_v7  ;;  %v66_v12 = vld [vmem:[%s1126_s0 + $0x180] sm:$0xff]  ;;  %v67_v13 = vld [vmem:[%s1126_s0 + $0x188] sm:$0xff]  ;;  %v68_v14 = vld [vmem:[%s1126_s0 + $0x190] sm:$0xff] }
   0x6   :  { %84 = vmatpush.msra.mxu0 %v70_v8  ;;  %113 = vmatpush.msra.mxu1 %v71_v9  ;;  %v69_v15 = vld [vmem:[%s1126_s0 + $0x198] sm:$0xff]  ;;  %v62_v16 = vld [vmem:[%s1126_s0 + $0x160] sm:$0xff]  ;;  %v63_v17 = vld [vmem:[%s1126_s0 + $0x168] sm:$0xff] }
   0x7   :  { %142 = vmatpush.msra.mxu2 %v72_v10  ;;  %171 = vmatpush.msra.mxu3 %v73_v11  ;;  %v64_v18 = vld [vmem:[%s1126_s0 + $0x170] sm:$0xff]  ;;  %v65_v19 = vld [vmem:[%s1126_s0 + $0x178] sm:$0xff]  ;;  %v58_v20 = vld [vmem:[%s1126_s0 + $0x140] sm:$0xff] }
   0x8   :  { %85 = vmatpush.msra.mxu0 %v66_v12  ;;  %114 = vmatpush.msra.mxu1 %v67_v13  ;;  %v59_v21 = vld [vmem:[%s1126_s0 + $0x148] sm:$0xff]  ;;  %v60_v22 = vld [vmem:[%s1126_s0 + $0x150] sm:$0xff]  ;;  %v61_v23 = vld [vmem:[%s1126_s0 + $0x158] sm:$0xff] }
   0x9   :  { %143 = vmatpush.msra.mxu2 %v68_v14  ;;  %172 = vmatpush.msra.mxu3 %v69_v15  ;;  %v54_v24 = vld [vmem:[%s1126_s0 + $0x120] sm:$0xff]  ;;  %v55_v25 = vld [vmem:[%s1126_s0 + $0x128] sm:$0xff]  ;;  %v56_v26 = vld [vmem:[%s1126_s0 + $0x130] sm:$0xff] }
   0xa   :  { %86 = vmatpush.msra.mxu0 %v62_v16  ;;  %115 = vmatpush.msra.mxu1 %v63_v17  ;;  %v57_v27 = vld [vmem:[%s1126_s0 + $0x138] sm:$0xff]  ;;  %v50_v28 = vld [vmem:[%s1126_s0 + $0x100] sm:$0xff]  ;;  %v51_v29 = vld [vmem:[%s1126_s0 + $0x108] sm:$0xff] }
   0xb   :  { %144 = vmatpush.msra.mxu2 %v64_v18  ;;  %173 = vmatpush.msra.mxu3 %v65_v19  ;;  %v52_v30 = vld [vmem:[%s1126_s0 + $0x110] sm:$0xff]  ;;  %v53_v31 = vld [vmem:[%s1126_s0 + $0x118] sm:$0xff]  ;;  %v46_v32 = vld [vmem:[%s1126_s0 + $0xe0] sm:$0xff] }
   0xc   :  { %87 = vmatpush.msra.mxu0 %v58_v20  ;;  %116 = vmatpush.msra.mxu1 %v59_v21  ;;  %v47_v33 = vld [vmem:[%s1126_s0 + $0xe8] sm:$0xff]  ;;  %v48_v34 = vld [vmem:[%s1126_s0 + $0xf0] sm:$0xff]  ;;  %v49_v35 = vld [vmem:[%s1126_s0 + $0xf8] sm:$0xff] }
   0xd   :  { %145 = vmatpush.msra.mxu2 %v60_v22  ;;  %174 = vmatpush.msra.mxu3 %v61_v23  ;;  %v42_v36 = vld [vmem:[%s1126_s0 + $0xc0] sm:$0xff]  ;;  %v43_v37 = vld [vmem:[%s1126_s0 + $0xc8] sm:$0xff]  ;;  %v44_v38 = vld [vmem:[%s1126_s0 + $0xd0] sm:$0xff] }
   0xe   :  { %88 = vmatpush.msra.mxu0 %v54_v24  ;;  %117 = vmatpush.msra.mxu1 %v55_v25  ;;  %v45_v39 = vld [vmem:[%s1126_s0 + $0xd8] sm:$0xff]  ;;  %v38_v40 = vld [vmem:[%s1126_s0 + $0xa0] sm:$0xff]  ;;  %v39_v41 = vld [vmem:[%s1126_s0 + $0xa8] sm:$0xff] }
   0xf   :  { %146 = vmatpush.msra.mxu2 %v56_v26  ;;  %175 = vmatpush.msra.mxu3 %v57_v27  ;;  %v40_v42 = vld [vmem:[%s1126_s0 + $0xb0] sm:$0xff]  ;;  %v41_v43 = vld [vmem:[%s1126_s0 + $0xb8] sm:$0xff]  ;;  %v34_v44 = vld [vmem:[%s1126_s0 + $0x80] sm:$0xff] }
  0x10   :  { %89 = vmatpush.msra.mxu0 %v50_v28  ;;  %118 = vmatpush.msra.mxu1 %v51_v29  ;;  %v35_v45 = vld [vmem:[%s1126_s0 + $0x88] sm:$0xff]  ;;  %v36_v46 = vld [vmem:[%s1126_s0 + $0x90] sm:$0xff]  ;;  %v37_v47 = vld [vmem:[%s1126_s0 + $0x98] sm:$0xff] }
  0x11   :  { %147 = vmatpush.msra.mxu2 %v52_v30  ;;  %176 = vmatpush.msra.mxu3 %v53_v31  ;;  %v30_v48 = vld [vmem:[%s1126_s0 + $0x60] sm:$0xff]  ;;  %v31_v49 = vld [vmem:[%s1126_s0 + $0x68] sm:$0xff]  ;;  %v32_v50 = vld [vmem:[%s1126_s0 + $0x70] sm:$0xff] }
  0x12   :  { %90 = vmatpush.msra.mxu0 %v46_v32  ;;  %119 = vmatpush.msra.mxu1 %v47_v33  ;;  %v33_v51 = vld [vmem:[%s1126_s0 + $0x78] sm:$0xff]  ;;  %v26_v52 = vld [vmem:[%s1126_s0 + $0x40] sm:$0xff]  ;;  %v27_v53 = vld [vmem:[%s1126_s0 + $0x48] sm:$0xff] }
  0x13   :  { %148 = vmatpush.msra.mxu2 %v48_v34  ;;  %177 = vmatpush.msra.mxu3 %v49_v35  ;;  %v28_v54 = vld [vmem:[%s1126_s0 + $0x50] sm:$0xff]  ;;  %v29_v55 = vld [vmem:[%s1126_s0 + $0x58] sm:$0xff]  ;;  %v22_v56 = vld [vmem:[%s1126_s0 + $0x20] sm:$0xff] }
  0x14   :  { %91 = vmatpush.msra.mxu0 %v42_v36  ;;  %120 = vmatpush.msra.mxu1 %v43_v37  ;;  %v23_v57 = vld [vmem:[%s1126_s0 + $0x28] sm:$0xff]  ;;  %v24_v58 = vld [vmem:[%s1126_s0 + $0x30] sm:$0xff]  ;;  %v25_v59 = vld [vmem:[%s1126_s0 + $0x38] sm:$0xff] }
  0x15   :  { %149 = vmatpush.msra.mxu2 %v44_v38  ;;  %178 = vmatpush.msra.mxu3 %v45_v39  ;;  %v18_v60 = vld [vmem:[%s1126_s0] sm:$0xff]  ;;  %v19_v61 = vld [vmem:[%s1126_s0 + $0x8] sm:$0xff]  ;;  %v20_v62 = vld [vmem:[%s1126_s0 + $0x10] sm:$0xff] }
  0x16   :  { %92 = vmatpush.msra.mxu0 %v38_v40  ;;  %121 = vmatpush.msra.mxu1 %v39_v41  ;;  %v21_v63 = vld [vmem:[%s1126_s0 + $0x18] sm:$0xff]  ;;  %v14_v0 = vld [vmem:[%s1127_s1] sm:$0xff]  ;;  %v15_v1 = vld [vmem:[%s1127_s1 + $0x8] sm:$0xff] }
  0x17   :  { %150 = vmatpush.msra.mxu2 %v40_v42  ;;  %179 = vmatpush.msra.mxu3 %v41_v43  ;;  %v16_v2 = vld [vmem:[%s1127_s1 + $0x10] sm:$0xff]  ;;  %v17_v3 = vld [vmem:[%s1127_s1 + $0x18] sm:$0xff] }
  0x18   :  { %93 = vmatpush.msra.mxu0 %v34_v44  ;;  %122 = vmatpush.msra.mxu1 %v35_v45 }
  0x19   :  { %151 = vmatpush.msra.mxu2 %v36_v46  ;;  %180 = vmatpush.msra.mxu3 %v37_v47 }
  0x1a   :  { %94 = vmatpush.msra.mxu0 %v30_v48  ;;  %123 = vmatpush.msra.mxu1 %v31_v49 }
  0x1b   :  { %152 = vmatpush.msra.mxu2 %v32_v50  ;;  %181 = vmatpush.msra.mxu3 %v33_v51 }
  0x1c   :  { %95 = vmatpush.msra.mxu0 %v26_v52  ;;  %124 = vmatpush.msra.mxu1 %v27_v53 }
  0x1d   :  { %153 = vmatpush.msra.mxu2 %v28_v54  ;;  %182 = vmatpush.msra.mxu3 %v29_v55 }
  0x1e   :  { %96 = vmatpush.msra.mxu0 %v22_v56  ;;  %125 = vmatpush.msra.mxu1 %v23_v57 }
  0x1f   :  { %154 = vmatpush.msra.mxu2 %v24_v58  ;;  %183 = vmatpush.msra.mxu3 %v25_v59 }
  0x20   :  { %97 = vmatpush.msra.mxu0 %v18_v60  ;;  %126 = vmatpush.msra.mxu1 %v19_v61 }
  0x21   :  { %155 = vmatpush.msra.mxu2 %v20_v62  ;;  %184 = vmatpush.msra.mxu3 %v21_v63 }
  0x22   :  { %98 = vmatmul.f32.vlgmr.msra.gmra.mxu0 %v14_v0  ;;  %127 = vmatmul.f32.vlgmr.msra.gmra.mxu1 %v14_v0 }
  0x23   :  { %156 = vmatmul.f32.vlgmr.msra.gmra.mxu2 %v14_v0  ;;  %185 = vmatmul.f32.vlgmr.msra.gmra.mxu3 %v14_v0 }
  0x2a   :  { %101 = vmatmul.f32.gmra.mxu0 %v15_v1  ;;  %130 = vmatmul.f32.gmra.mxu1 %v15_v1 }
  0x2b   :  { %159 = vmatmul.f32.gmra.mxu2 %v15_v1  ;;  %188 = vmatmul.f32.gmra.mxu3 %v15_v1 }
  0x32   :  { %104 = vmatmul.f32.gmra.mxu0 %v16_v2  ;;  %133 = vmatmul.f32.gmra.mxu1 %v16_v2 }
  0x33   :  { %162 = vmatmul.f32.gmra.mxu2 %v16_v2  ;;  %191 = vmatmul.f32.gmra.mxu3 %v16_v2 }
  0x3a   :  { %107 = vmatmul.f32.gmra.mxu0 %v17_v3  ;;  %136 = vmatmul.f32.gmra.mxu1 %v17_v3 }
  0x3b   :  { %165 = vmatmul.f32.gmra.mxu2 %v17_v3  ;;  %194 = vmatmul.f32.gmra.mxu3 %v17_v3 }
  0x9f   :  { %v99_v4 = vpop.f32.mrf.mxu0  ;;  %v128_v5 = vpop.f32.mrf.mxu1 }
  0xa0   :  { %v466_v6 = vmul.f32 -1.442695, %v99_v4  ;;  %v467_v7 = vmul.f32 -1.442695, %v128_v5 }
  0xa2   :  { %478 = vpow2.f32 %v466_v6 }
  0xa3   :  { %480 = vpow2.f32 %v467_v7 }
  0xa6   :  { %v157_v8 = vpop.f32.mrf.mxu2  ;;  %v186_v9 = vpop.f32.mrf.mxu3 }
  0xa7   :  { %v468_v10 = vmul.f32 -1.442695, %v157_v8  ;;  %v469_v11 = vmul.f32 -1.442695, %v186_v9  ;;  %v102_v12 = vpop.f32.mrf.mxu0  ;;  %v131_v13 = vpop.f32.mrf.mxu1 }
  0xa8   :  { %v479_v14 = vpop.eup %478  ;;  %v470_v16 = vmul.f32 -1.442695, %v102_v12  ;;  %v471_v17 = vmul.f32 -1.442695, %v131_v13 }
  0xa9   :  { %v766_v15 = vadd.f32 1.0, %v479_v14  ;;  %482 = vpow2.f32 %v468_v10  ;;  %v481_v18 = vpop.eup %480 }
  0xaa   :  { %484 = vpow2.f32 %v469_v11  ;;  %v769_v21 = vadd.f32 1.0, %v481_v18 }
  0xab   :  { %486 = vrcp.f32 %v766_v15  ;;  %v223_v51 = vand.u32 2147483647, %v766_v15  ;;  %v225_v52 = vand.u32 2147483648, %v766_v15  ;;  %vm219_vm0 = vweird.f32 %v766_v15 }
  0xac   :  { %488 = vpow2.f32 %v470_v16  ;;  %v240_v55 = vand.u32 2147483648, %v769_v21  ;;  %v238_v1 = vand.u32 2147483647, %v769_v21  ;;  %vm234_vm7 = vweird.f32 %v769_v21 }
  0xad   :  { %490 = vpow2.f32 %v471_v17  ;;  %vm818_vm1 = vcmp.eq.f32.partialorder %v223_v51, 8.507059e+37  ;;  %v226_v0 = vor.u32 1.1754944e-38, %v225_v52 }
  0xae   :  { %v160_v19 = vpop.f32.mrf.mxu2  ;;  %v189_v20 = vpop.f32.mrf.mxu3  ;;  %v829_v5 = vor.u32 1.1754944e-38, %v240_v55  ;;  %v430_v55 = vld [vmem:[%s1128_s2] sm:$0xff]  ;;  %vm925_vm15 = vcmp.eq.f32.partialorder %v238_v1, 8.507059e+37 }
  0xaf   :  { %v472_v22 = vmul.f32 -1.442695, %v160_v19  ;;  %v105_v23 = vpop.f32.mrf.mxu0  ;;  %v483_v24 = vpop.eup %482  ;;  %v473_v25 = vmul.f32 -1.442695, %v189_v20 }
  0xb0   :  { %v485_v26 = vpop.eup %484  ;;  %v474_v27 = vmul.f32 -1.442695, %v105_v23  ;;  %v134_v28 = vpop.f32.mrf.mxu1  ;;  %v780_v36 = vadd.f32 1.0, %v483_v24 }
  0xb1   :  { %492 = vpow2.f32 %v472_v22  ;;  %v771_v29 = vpop.eup %486  ;;  %v475_v33 = vmul.f32 -1.442695, %v134_v28  ;;  %v783_v39 = vadd.f32 1.0, %v485_v26 }
  0xb2   :  { %v489_v30 = vpop.eup %488  ;;  %494 = vrcp.f32 %v769_v21  ;;  %v215_v35 = vmul.f32 %v771_v29, %v766_v15  ;;  %vm220_vm2 = vweird.f32 %v771_v29  ;;  %v253_v12 = vand.u32 2147483647, %v780_v36 }
  0xb3   :  { %v491_v31 = vpop.eup %490  ;;  %v774_v32 = vadd.f32 1.0, %v489_v30  ;;  %496 = vpow2.f32 %v473_v25  ;;  %v255_v13 = vand.u32 2147483648, %v780_v36  ;;  %vm861_vm5 = vmor %vm219_vm0, %vm220_vm2  ;;  %vm249_vm0 = vweird.f32 %v780_v36 }
  0xb4   :  { %v776_v34 = vadd.f32 1.0, %v491_v31  ;;  %498 = vpow2.f32 %v474_v27  ;;  %v216_v45 = vsub.f32 1.0, %v215_v35 }
  0xb5   :  { %500 = vrcp.f32 %v774_v32  ;;  %v301_v3 = vand.u32 2147483648, %v774_v32  ;;  %vm295_vm3 = vweird.f32 %v774_v32 }
  0xb6   :  { %v163_v37 = vpop.f32.mrf.mxu2  ;;  %502 = vrcp.f32 %v776_v34  ;;  %v192_v41 = vpop.f32.mrf.mxu3  ;;  %v217_v57 = vmul.f32 %v771_v29, %v216_v45  ;;  %v316_v11 = vand.u32 2147483648, %v776_v34  ;;  %vm310_vm4 = vweird.f32 %v776_v34 }
  0xb7   :  { %v493_v38 = vpop.eup %492  ;;  %v476_v40 = vmul.f32 -1.442695, %v163_v37  ;;  %504 = vpow2.f32 %v475_v33  ;;  %v477_v47 = vmul.f32 -1.442695, %v192_v41  ;;  %v108_v19 = vpop.f32.mrf.mxu0  ;;  %v302_v22 = vor.u32 1.1754944e-38, %v301_v3 }
  0xb8   :  { %v786_v42 = vpop.eup %494  ;;  %v788_v43 = vadd.f32 1.0, %v493_v38  ;;  %v218_v8 = vadd.f32 %v771_v29, %v217_v57  ;;  %v875_v31 = vor.u32 1.1754944e-38, %v316_v11  ;;  %v299_v33 = vand.u32 2147483647, %v774_v32 }
  0xb9   :  { %506 = vpow2.f32 %v476_v40  ;;  %v497_v44 = vpop.eup %496  ;;  %v811_v59 = vmul.f32 %v786_v42, %v769_v21  ;;  %vm235_vm8 = vweird.f32 %v786_v42 }
  0xba   :  { %508 = vrcp.f32 %v780_v36  ;;  %v499_v46 = vpop.eup %498  ;;  %v794_v49 = vadd.f32 1.0, %v497_v44  ;;  %v331_v18 = vand.u32 2147483648, %v788_v43  ;;  %v222_v27 = vsel %vm861_vm5, %v771_v29, %v218_v8  ;;  %vm974_vm5 = vmor %vm234_vm7, %vm235_vm8 }
  0xbb   :  { %510 = vrcp.f32 %v783_v39  ;;  %v792_v48 = vpop.eup %500  ;;  %v796_v50 = vadd.f32 1.0, %v499_v46  ;;  %v231_v10 = vsub.f32 1.0, %v811_v59  ;;  %v227_v45 = vsel %vm818_vm1, %v226_v0, %v222_v27 }
  0xbc   :  { %v800_v53 = vpop.eup %502  ;;  %v291_v54 = vmul.f32 %v792_v48, %v774_v32  ;;  %512 = vrcp.f32 %v788_v43  ;;  %vm296_vm6 = vweird.f32 %v792_v48  ;;  %v884_v38 = vor.u32 1.1754944e-38, %v331_v18 }
  0xbd   :  { %v505_v56 = vpop.eup %504  ;;  %514 = vrcp.f32 %v796_v50  ;;  %v306_v4 = vmul.f32 %v800_v53, %v776_v34  ;;  %v346_v44 = vand.u32 2147483648, %v794_v49  ;;  %vm896_vm9 = vmor %vm295_vm3, %vm296_vm6  ;;  %vm371_vm10 = vweird.f32 %v796_v50 }
  0xbe   :  { %v292_v60 = vsub.f32 1.0, %v291_v54  ;;  %v813_v61 = vadd.f32 1.0, %v505_v56  ;;  %516 = vpow2.f32 %v477_v47  ;;  %v375_v32 = vand.u32 2147483647, %v796_v50 }
  0xbf   :  { %v507_v58 = vpop.eup %506  ;;  %518 = vrcp.f32 %v794_v49  ;;  %v307_v23 = vsub.f32 1.0, %v306_v4  ;;  %vm300_vm11 = vcmp.eq.f32.partialorder %v299_v33, 8.507059e+37  ;;  %v232_v56 = vmul.f32 %v786_v42, %v231_v10  ;;  %v137_v10 = vpop.f32.mrf.mxu1 }
  0xc0   :  { %v815_v62 = vpop.eup %508  ;;  %520 = vrcp.f32 %v813_v61  ;;  %v293_v6 = vmul.f32 %v792_v48, %v292_v60  ;;  %v832_v7 = vadd.f32 1.0, %v507_v58  ;;  %vm325_vm12 = vweird.f32 %v788_v43 }
  0xc1   :  { %v823_v2 = vpop.eup %510  ;;  %v846_v16 = vmul.f32 %v815_v62, %v780_v36  ;;  %v308_v40 = vmul.f32 %v800_v53, %v307_v23  ;;  %vm311_vm14 = vweird.f32 %v800_v53  ;;  %vm932_vm1 = vcmp.eq.f32.partialorder %v375_v32, 8.507059e+37 }
  0xc2   :  { %v836_v9 = vpop.eup %512  ;;  %v850_v17 = vmul.f32 %v823_v2, %v783_v39  ;;  %522 = vrcp.f32 %v832_v7  ;;  %v294_v28 = vadd.f32 %v792_v48, %v293_v6  ;;  %v392_v1 = vand.u32 2147483648, %v813_v61  ;;  %vm945_vm2 = vmor %vm310_vm4, %vm311_vm14 }
  0xc3   :  { %v842_v14 = vpop.eup %514  ;;  %524 = vtanh.f32 %v108_v19  ;;  %v246_v35 = vsub.f32 1.0, %v846_v16  ;;  %v321_v37 = vmul.f32 %v836_v9, %v788_v43  ;;  %v309_v3 = vadd.f32 %v800_v53, %v308_v40 }
  0xc4   :  { %v517_v20 = vpop.eup %516  ;;  %v367_v24 = vmul.f32 %v842_v14, %v796_v50  ;;  %v261_v29 = vsub.f32 1.0, %v850_v17  ;;  %v298_v54 = vsel %vm896_vm9, %v792_v48, %v294_v28  ;;  %vm372_vm13 = vweird.f32 %v842_v14  ;;  %v432_v17 = vld [vmem:[%s1128_s2 + $0x10] sm:$0xff] }
  0xc5   :  { %v865_v26 = vpop.eup %518  ;;  %v903_v52 = vadd.f32 1.0, %v517_v20  ;;  %v322_v58 = vsub.f32 1.0, %v321_v37  ;;  %v377_v48 = vand.u32 2147483648, %v796_v50  ;;  %v303_v59 = vsel %vm300_vm11, %v302_v22, %v298_v54  ;;  %vm954_vm3 = vmor %vm371_vm10, %vm372_vm13  ;;  %v166_v50 = vpop.f32.mrf.mxu2 }
  0xc6   :  { %v873_v30 = vpop.eup %520  ;;  %v368_v15 = vsub.f32 1.0, %v367_v24  ;;  %v336_v41 = vmul.f32 %v865_v26, %v794_v49  ;;  %v434_v0 = vmul.f32 %v430_v55, %v303_v59  ;;  %v930_v16 = vor.u32 1.1754944e-38, %v346_v44  ;;  %v431_v44 = vld [vmem:[%s1128_s2 + $0x8] sm:$0xff] }
  0xc7   :  { %v382_v51 = vmul.f32 %v873_v30, %v813_v61  ;;  %526 = vrcp.f32 %v903_v52  ;;  %v233_v20 = vadd.f32 %v786_v42, %v232_v56  ;;  %v323_v22 = vmul.f32 %v836_v9, %v322_v58 }
  0xc8   :  { %v369_v47 = vmul.f32 %v842_v14, %v368_v15  ;;  %v914_v57 = vpop.eup %522  ;;  %v337_v63 = vsub.f32 1.0, %v336_v41  ;;  %v378_v23 = vor.u32 1.1754944e-38, %v377_v48  ;;  %v313_v15 = vsel %vm945_vm2, %v800_v53, %v309_v3 }
  0xc9   :  { %v525_v60 = vpop.eup %524  ;;  %v383_v6 = vsub.f32 1.0, %v382_v51  ;;  %v397_v19 = vmul.f32 %v914_v57, %v832_v7  ;;  %v314_v33 = vand.u32 2147483647, %v776_v34  ;;  %528 = vtanh.f32 %v137_v10 }
  0xca   :  { %v370_v4 = vadd.f32 %v842_v14, %v369_v47  ;;  %v438_v8 = vmul.f32 %v525_v60, %v227_v45  ;;  %v338_v27 = vmul.f32 %v865_v26, %v337_v63  ;;  %vm340_vm4 = vweird.f32 %v794_v49 }
  0xcb   :  { %v384_v40 = vmul.f32 %v873_v30, %v383_v6  ;;  %v247_v53 = vmul.f32 %v815_v62, %v246_v35  ;;  %vm981_vm6 = vcmp.eq.f32.partialorder %v253_v12, 8.507059e+37  ;;  %vm386_vm9 = vweird.f32 %v813_v61 }
  0xcc   :  { %v442_v24 = vadd.f32 %v438_v8, %v434_v0  ;;  %v374_v37 = vsel %vm954_vm3, %v842_v14, %v370_v4  ;;  %v398_v41 = vsub.f32 1.0, %v397_v19  ;;  %v237_v21 = vsel %vm974_vm5, %v786_v42, %v233_v20  ;;  %v195_v0 = vpop.f32.mrf.mxu3 }
  0xcd   :  { %vm315_vm7 = vcmp.eq.f32.partialorder %v314_v33, 8.507059e+37  ;;  %vm250_vm8 = vweird.f32 %v815_v62  ;;  %v993_v35 = vpop.eup %526  ;;  %v248_v45 = vadd.f32 %v815_v62, %v247_v53  ;;  %v324_v46 = vadd.f32 %v836_v9, %v323_v22 }
  0xce   :  { %530 = vtanh.f32 %v442_v24  ;;  %458 = vst [vmem:[%s1129_s3 + $0x20] sm:$0xff] %v442_v24  ;;  %v318_v12 = vsel %vm315_vm7, %v875_v31, %v313_v15  ;;  %vm326_vm10 = vweird.f32 %v836_v9  ;;  %v379_v42 = vsel %vm932_vm1, %v378_v23, %v374_v37  ;;  %v433_v24 = vld [vmem:[%s1128_s2 + $0x18] sm:$0xff] }
  0xcf   :  { %vm387_vm11 = vweird.f32 %v873_v30  ;;  %vm1004_vm13 = vmor %vm325_vm12, %vm326_vm10  ;;  %v329_v51 = vand.u32 2147483647, %v788_v43  ;;  %532 = vtanh.f32 %v166_v50  ;;  %v1010_v31 = vadd.f32 %v873_v30, %v384_v40  ;;  %v529_v56 = vpop.eup %528 }
  0xd0   :  { %v435_v54 = vmul.f32 %v431_v44, %v318_v12  ;;  %v328_v55 = vsel %vm1004_vm13, %v836_v9, %v324_v46  ;;  %v262_v32 = vmul.f32 %v823_v2, %v261_v29  ;;  %v399_v58 = vmul.f32 %v914_v57, %v398_v41  ;;  %vm1028_vm12 = vmor %vm249_vm0, %vm250_vm8 }
  0xd1   :  { %v412_v48 = vmul.f32 %v993_v35, %v903_v52  ;;  %v242_v43 = vsel %vm925_vm15, %v829_v5, %v237_v21  ;;  %vm330_vm14 = vcmp.eq.f32.partialorder %v329_v51, 8.507059e+37  ;;  %v252_v60 = vsel %vm1028_vm12, %v815_v62, %v248_v45 }
  0xd2   :  { %v439_v59 = vmul.f32 %v529_v56, %v242_v43  ;;  %v256_v5 = vor.u32 1.1754944e-38, %v255_v13  ;;  %v333_v63 = vsel %vm330_vm14, %v884_v38, %v328_v55  ;;  %v263_v4 = vadd.f32 %v823_v2, %v262_v32 }
  0xd3   :  { %vm264_vm15 = vweird.f32 %v783_v39  ;;  %vm265_vm0 = vweird.f32 %v823_v2  ;;  %v436_v8 = vmul.f32 %v432_v17, %v333_v63  ;;  %v339_v10 = vadd.f32 %v865_v26, %v338_v27 }
  0xd4   :  { %v531_v29 = vpop.eup %530  ;;  %v443_v6 = vadd.f32 %v439_v59, %v435_v54  ;;  %vm341_vm1 = vweird.f32 %v865_v26  ;;  %v257_v36 = vsel %vm981_vm6, %v256_v5, %v252_v60  ;;  %v270_v13 = vand.u32 2147483648, %v783_v39  ;;  %vm1083_vm6 = vmor %vm386_vm9, %vm387_vm11 }
  0xd5   :  { %v450_v3 = vmul.f32 %v531_v29, %v379_v42  ;;  %v533_v62 = vpop.eup %532  ;;  %vm1054_vm2 = vmor %vm340_vm4, %vm341_vm1  ;;  %v344_v11 = vand.u32 2147483647, %v794_v49  ;;  %534 = vtanh.f32 %v195_v0  ;;  %v268_v19 = vand.u32 2147483647, %v783_v39 }
  0xd6   :  { %536 = vtanh.f32 %v443_v6  ;;  %459 = vst [vmem:[%s1129_s3 + $0x28] sm:$0xff] %v443_v6  ;;  %v440_v18 = vmul.f32 %v533_v62, %v257_v36  ;;  %v343_v20 = vsel %vm1054_vm2, %v865_v26, %v339_v10  ;;  %v390_v22 = vand.u32 2147483647, %v813_v61  ;;  %vm1072_vm4 = vmor %vm264_vm15, %vm265_vm0 }
  0xd7   :  { %454 = vst [vmem:[%s1129_s3] sm:$0xff] %v450_v3  ;;  %vm401_vm3 = vweird.f32 %v832_v7  ;;  %v413_v23 = vsub.f32 1.0, %v412_v48  ;;  %vm345_vm5 = vcmp.eq.f32.partialorder %v344_v11, 8.507059e+37  ;;  %v393_v39 = vor.u32 1.1754944e-38, %v392_v1 }
  0xd8   :  { %v444_v25 = vadd.f32 %v440_v18, %v436_v8  ;;  %v267_v27 = vsel %vm1072_vm4, %v823_v2, %v263_v4  ;;  %v348_v28 = vsel %vm345_vm5, %v930_v16, %v343_v20  ;;  %v389_v15 = vsel %vm1083_vm6, %v873_v30, %v1010_v31 }
  0xd9   :  { %v400_v33 = vadd.f32 %v914_v57, %v399_v58  ;;  %vm402_vm9 = vweird.f32 %v914_v57  ;;  %v271_v37 = vor.u32 1.1754944e-38, %v270_v13  ;;  %v407_v61 = vand.u32 2147483648, %v832_v7 }
  0xda   :  { %538 = vtanh.f32 %v444_v25  ;;  %460 = vst [vmem:[%s1129_s3 + $0x30] sm:$0xff] %v444_v25  ;;  %vm269_vm7 = vcmp.eq.f32.partialorder %v268_v19, 8.507059e+37  ;;  %v437_v2 = vmul.f32 %v433_v24, %v348_v28  ;;  %vm391_vm8 = vcmp.eq.f32.partialorder %v390_v22, 8.507059e+37  ;;  %vm403_vm10 = vmor %vm401_vm3, %vm402_vm9 }
  0xdb   :  { %v535_v16 = vpop.eup %534  ;;  %v405_v1 = vand.u32 2147483647, %v832_v7  ;;  %v414_v30 = vmul.f32 %v993_v35, %v413_v23  ;;  %v272_v40 = vsel %vm269_vm7, %v271_v37, %v267_v27  ;;  %v394_v50 = vsel %vm391_vm8, %v393_v39, %v389_v15 }
  0xdc   :  { %v537_v34 = vpop.eup %536  ;;  %v441_v53 = vmul.f32 %v535_v16, %v272_v40  ;;  %v404_v14 = vsel %vm403_vm10, %v914_v57, %v400_v33  ;;  %v408_v21 = vor.u32 1.1754944e-38, %v407_v61  ;;  %vm417_vm13 = vweird.f32 %v993_v35 }
  0xdd   :  { %v451_v41 = vmul.f32 %v537_v34, %v394_v50  ;;  %vm406_vm11 = vcmp.eq.f32.partialorder %v405_v1, 8.507059e+37  ;;  %v415_v12 = vadd.f32 %v993_v35, %v414_v30  ;;  %v422_v7 = vand.u32 2147483648, %v903_v52 }
  0xde   :  { %v445_v44 = vadd.f32 %v441_v53, %v437_v2  ;;  %v409_v46 = vsel %vm406_vm11, %v408_v21, %v404_v14  ;;  %vm416_vm12 = vweird.f32 %v903_v52  ;;  %v420_v57 = vand.u32 2147483647, %v903_v52 }
  0xdf   :  { %455 = vst [vmem:[%s1129_s3 + $0x8] sm:$0xff] %v451_v41  ;;  %vm418_vm14 = vmor %vm416_vm12, %vm417_vm13  ;;  %v423_v51 = vor.u32 1.1754944e-38, %v422_v7 }
  0xe0   :  { %v539_v45 = vpop.eup %538  ;;  %540 = vtanh.f32 %v445_v44  ;;  %461 = vst [vmem:[%s1129_s3 + $0x38] sm:$0xff] %v445_v44  ;;  %v419_v47 = vsel %vm418_vm14, %v993_v35, %v415_v12  ;;  %vm421_vm15 = vcmp.eq.f32.partialorder %v420_v57, 8.507059e+37 }
  0xe1   :  { %v452_v42 = vmul.f32 %v539_v45, %v409_v46  ;;  %v424_v54 = vsel %vm421_vm15, %v423_v51, %v419_v47 }
  0xe3   :  { %456 = vst [vmem:[%s1129_s3 + $0x10] sm:$0xff] %v452_v42 }
  0xe6   :  { %v541_v31 = vpop.eup %540 }
  0xe7   :  { %v453_v55 = vmul.f32 %v541_v31, %v424_v54 }
  0xe9   :  { %457 = vst [vmem:[%s1129_s3 + $0x18] sm:$0xff] %v453_v55 }

</bundles_post_ra>
